<compile_context>
chip_gen: v7x
topology: tpu7x:2x2x1
jax: 0.10.0
libtpu: 0.0.40
codegen_flags: <defaults>
</compile_context>

<pallas_src>
import functools
import math

import jax
import jax.numpy as jnp
from jax import lax
from jax.experimental import pallas as pl
from jax.experimental.pallas import tpu as pltpu


def _linear_attention_kernel(x_ref, w_qkv_ref, w_out_ref, b_out_ref, o_ref, *,
                             heads, dim_head):
    hidden = heads * dim_head

    x = x_ref[0]                # (C, N)           bf16
    w_qkv = w_qkv_ref[...]      # (3*hidden, C)    bf16
    w_out = w_out_ref[...]      # (C, hidden)      bf16
    b_out = b_out_ref[...]      # (C, 1)           f32

    n = x.shape[-1]

    # 1x1 conv == channel matmul: one big MXU matmul, f32 accumulation.
    qkv = jnp.dot(w_qkv, x, preferred_element_type=jnp.float32)   # (3*hidden, N) f32

    # Channel layout is (qkv, heads, dim_head) — split and head-batch.
    q = qkv[:hidden].reshape(heads, dim_head, n)
    k = qkv[hidden:2 * hidden].reshape(heads, dim_head, n)
    v = qkv[2 * hidden:].reshape(heads, dim_head, n)

    # Softmax over the spatial (lane) axis, in f32; divide via EUP reciprocal.
    m = jnp.max(k, axis=-1, keepdims=True)
    e = jnp.exp(k - m)
    inv_denom = pl.reciprocal(jnp.sum(e, axis=-1, keepdims=True), approx=True)
    k_sm = e * inv_denom

    k_bf = k_sm.astype(jnp.bfloat16)
    v_bf = v.astype(jnp.bfloat16)
    q_bf = q.astype(jnp.bfloat16)

    # context[h, d, e] = sum_n k[h, d, n] * v[h, e, n]   (head-batched, no transposes)
    context = lax.dot_general(
        k_bf, v_bf,
        dimension_numbers=(((2,), (2,)), ((0,), (0,))),
        preferred_element_type=jnp.float32)                        # (heads, dh, dh)

    # out[h, e, n] = sum_d context[h, d, e] * q[h, d, n]
    out_heads = lax.dot_general(
        context.astype(jnp.bfloat16), q_bf,
        dimension_numbers=(((1,), (1,)), ((0,), (0,))),
        preferred_element_type=jnp.float32)                        # (heads, dh, N)

    out_flat = out_heads.reshape(hidden, n).astype(jnp.bfloat16)   # (hidden, N)

    # Output 1x1 conv (with bias), again W @ x with no transpose.
    y = jnp.dot(w_out, out_flat, preferred_element_type=jnp.float32) + b_out
    o_ref[0] = y.astype(o_ref.dtype)


def linear_attention(x, params, *, heads, dim_head):
    """x: [B, C, H, W] float32. Returns [B, C, H, W] float32."""
    B, C, H, W = x.shape
    N = H * W
    hidden = heads * dim_head

    w_qkv = params["to_qkv_weight"].reshape(3 * hidden, C)
    w_out = params["to_out_weight"].reshape(C, hidden)
    b_out = params["to_out_bias"].reshape(C, 1)

    x_flat = x.reshape(B, C, N)

    kernel = functools.partial(_linear_attention_kernel,
                               heads=heads, dim_head=dim_head)

    out = pl.pallas_call(
        kernel,
        out_shape=jax.ShapeDtypeStruct((B, C, N), jnp.float32),
        grid=(B,),
        in_specs=[
            pl.BlockSpec((1, C, N), lambda b: (b, 0, 0)),          # x (per batch)
            pl.BlockSpec((3 * hidden, C), lambda b: (0, 0)),       # qkv weight (resident)
            pl.BlockSpec((C, hidden), lambda b: (0, 0)),           # out weight (resident)
            pl.BlockSpec((C, 1), lambda b: (0, 0)),                # out bias
        ],
        out_specs=pl.BlockSpec((1, C, N), lambda b: (b, 0, 0)),
        compiler_params=pltpu.CompilerParams(
            dimension_semantics=("parallel",)),
    )(
        x_flat.astype(jnp.bfloat16),       # cast in wrapper: halves DMA bytes
        w_qkv.astype(jnp.bfloat16),
        w_out.astype(jnp.bfloat16),
        b_out,                             # bias added to f32 accumulator
    )
    return out.reshape(B, C, H, W)


def init_params(key, dim, heads, dim_head):
    """Conv2d-default-style init (kaiming-uniform-ish bounds)."""
    hidden = heads * dim_head
    kq, ko, kb = jax.random.split(key, 3)
    bq = 1.0 / math.sqrt(dim)
    bo = 1.0 / math.sqrt(hidden)
    return {
        "to_qkv_weight": jax.random.uniform(kq, (3 * hidden, dim), jnp.float32, -bq, bq),
        "to_out_weight": jax.random.uniform(ko, (dim, hidden), jnp.float32, -bo, bo),
        "to_out_bias": jax.random.uniform(kb, (dim,), jnp.float32, -bo, bo),
    }


def _reference(x, params, heads, dim_head):
    """Pure-JAX f32 reference of the PyTorch LinearAttention forward."""
    B, C, H, W = x.shape
    N = H * W
    hidden = heads * dim_head
    w_qkv = params["to_qkv_weight"]
    w_out = params["to_out_weight"]
    b_out = params["to_out_bias"]

    xf = x.reshape(B, C, N)
    qkv = jnp.einsum("oc,bcn->bon", w_qkv, xf)                 # (B, 3*hidden, N)
    qkv = qkv.reshape(B, 3, heads, dim_head, N)
    q, k, v = qkv[:, 0], qkv[:, 1], qkv[:, 2]
    k = jax.nn.softmax(k, axis=-1)
    context = jnp.einsum("bhdn,bhen->bhde", k, v)
    out = jnp.einsum("bhde,bhdn->bhen", context, q)            # (B, heads, dh, N)
    out = out.reshape(B, hidden, N)
    y = jnp.einsum("oc,bcn->bon", w_out, out) + b_out[None, :, None]
    return y.reshape(B, C, H, W)


if __name__ == "__main__":
    B, C, H, W = 2, 16, 16, 16          # N = 256 (lane-dense, multiple of 128)
    heads, dim_head = 4, 32             # hidden_dim = 128

    root = jax.random.PRNGKey(0)
    kp, kx = jax.random.split(root)
    params = init_params(kp, C, heads, dim_head)
    x = jax.random.normal(kx, (B, C, H, W), jnp.float32)

    out = linear_attention(x, params, heads=heads, dim_head=dim_head)
    jax.block_until_ready(out)

    ref = _reference(x, params, heads, dim_head)
    err = float(jnp.max(jnp.abs(out - ref)))
    scale = float(jnp.max(jnp.abs(ref)))
    # bf16 MXU operands (f32 accumulation) -> relative tolerance loosened.
    assert err <= 3e-2 * scale + 1e-3, (err, scale)

    print("KERNEL_OK")
</pallas_src>

<mosaic_0001>
module attributes {stable_mosaic.version = 11 : i64} {
  func.func @_linear_attention_kernel(%arg0: i32, %arg1: memref<1x16x256xbf16, #tpu.memory_space<vmem>>, %arg2: memref<384x16xbf16, #tpu.memory_space<vmem>>, %arg3: memref<16x128xbf16, #tpu.memory_space<vmem>>, %arg4: memref<16x1xf32, #tpu.memory_space<vmem>>, %arg5: memref<1x16x256xf32, #tpu.memory_space<vmem>>) attributes {dimension_semantics = [#tpu.dimension_semantics<parallel>], iteration_bounds = array<i64: 2>, scalar_prefetch = 0 : i64, scratch_operands = 0 : i64, tpu.core_type = #tpu.core_type<tc>, window_params = [{transform_indices = @transform_0, window_bounds = array<i64: 1, 16, 256>}, {pipeline_mode = #tpu.pipeline_mode<synchronous>, transform_indices = @transform_1, window_bounds = array<i64: 384, 16>}, {pipeline_mode = #tpu.pipeline_mode<synchronous>, transform_indices = @transform_2, window_bounds = array<i64: 16, 128>}, {pipeline_mode = #tpu.pipeline_mode<synchronous>, transform_indices = @transform_3, window_bounds = array<i64: 16, 1>}, {transform_indices = @transform_4, window_bounds = array<i64: 1, 16, 256>}]} {
    %c0 = arith.constant 0 : index
    %c0_0 = arith.constant 0 : index
    %c0_1 = arith.constant 0 : index
    %0 = vector.load %arg1[%c0, %c0_0, %c0_1] : memref<1x16x256xbf16, #tpu.memory_space<vmem>>, vector<1x16x256xbf16>
    %1 = vector.shape_cast %0 : vector<1x16x256xbf16> to vector<16x256xbf16>
    %c0_2 = arith.constant 0 : index
    %c0_3 = arith.constant 0 : index
    %2 = vector.load %arg2[%c0_2, %c0_3] : memref<384x16xbf16, #tpu.memory_space<vmem>>, vector<384x16xbf16>
    %c0_4 = arith.constant 0 : index
    %c0_5 = arith.constant 0 : index
    %3 = vector.load %arg3[%c0_4, %c0_5] : memref<16x128xbf16, #tpu.memory_space<vmem>>, vector<16x128xbf16>
    %c0_6 = arith.constant 0 : index
    %c0_7 = arith.constant 0 : index
    %4 = vector.load %arg4[%c0_6, %c0_7] : memref<16x1xf32, #tpu.memory_space<vmem>>, vector<16x1xf32>
    %cst = arith.constant dense<0.000000e+00> : vector<384x256xf32>
    %5 = tpu.matmul %2, %1, %cst {dimension_numbers = #tpu.dot_dimension_numbers<[1], [0], [0], [1], [0, 0, 1, 1], [], []>} : vector<384x16xbf16>, vector<16x256xbf16>, vector<384x256xf32> -> vector<384x256xf32>
    %6 = vector.extract_strided_slice %5 {offsets = [0, 0], sizes = [128, 256], strides = [1, 1]} : vector<384x256xf32> to vector<128x256xf32>
    %7 = vector.shape_cast %6 : vector<128x256xf32> to vector<4x32x256xf32>
    %8 = vector.extract_strided_slice %5 {offsets = [128, 0], sizes = [128, 256], strides = [1, 1]} : vector<384x256xf32> to vector<128x256xf32>
    %9 = vector.shape_cast %8 : vector<128x256xf32> to vector<4x32x256xf32>
    %10 = vector.extract_strided_slice %5 {offsets = [256, 0], sizes = [128, 256], strides = [1, 1]} : vector<384x256xf32> to vector<128x256xf32>
    %11 = vector.shape_cast %10 : vector<128x256xf32> to vector<4x32x256xf32>
    %cst_8 = arith.constant dense<0xFF800000> : vector<4x32xf32>
    %12 = vector.multi_reduction <maximumf>, %9, %cst_8 [2] : vector<4x32x256xf32> to vector<4x32xf32>
    %13 = vector.shape_cast %12 : vector<4x32xf32> to vector<4x32x1xf32>
    %14 = vector.broadcast %13 : vector<4x32x1xf32> to vector<4x32x256xf32>
    %15 = arith.subf %9, %14 : vector<4x32x256xf32>
    %16 = math.exp %15 : vector<4x32x256xf32>
    %cst_9 = arith.constant dense<0.000000e+00> : vector<4x32xf32>
    %17 = vector.multi_reduction <add>, %16, %cst_9 [2] : vector<4x32x256xf32> to vector<4x32xf32>
    %18 = vector.shape_cast %17 : vector<4x32xf32> to vector<4x32x1xf32>
    %19 = tpu.reciprocal %18 {approx = true} : vector<4x32x1xf32> -> vector<4x32x1xf32>
    %20 = vector.broadcast %19 : vector<4x32x1xf32> to vector<4x32x256xf32>
    %21 = arith.mulf %16, %20 : vector<4x32x256xf32>
    %22 = arith.truncf %21 : vector<4x32x256xf32> to vector<4x32x256xbf16>
    %23 = arith.truncf %11 : vector<4x32x256xf32> to vector<4x32x256xbf16>
    %24 = arith.truncf %7 : vector<4x32x256xf32> to vector<4x32x256xbf16>
    %cst_10 = arith.constant dense<0.000000e+00> : vector<4x32x32xf32>
    %25 = tpu.matmul %22, %23, %cst_10 {dimension_numbers = #tpu.dot_dimension_numbers<[2], [2], [1], [1], [0, 0, 0, 1, 1, 1], [0], [0]>} : vector<4x32x256xbf16>, vector<4x32x256xbf16>, vector<4x32x32xf32> -> vector<4x32x32xf32>
    %26 = arith.truncf %25 : vector<4x32x32xf32> to vector<4x32x32xbf16>
    %cst_11 = arith.constant dense<0.000000e+00> : vector<4x32x256xf32>
    %27 = tpu.matmul %26, %24, %cst_11 {dimension_numbers = #tpu.dot_dimension_numbers<[1], [1], [2], [2], [0, 0, 0, 2, 1, 2], [0], [0]>} : vector<4x32x32xbf16>, vector<4x32x256xbf16>, vector<4x32x256xf32> -> vector<4x32x256xf32>
    %28 = vector.shape_cast %27 : vector<4x32x256xf32> to vector<128x256xf32>
    %29 = arith.truncf %28 : vector<128x256xf32> to vector<128x256xbf16>
    %cst_12 = arith.constant dense<0.000000e+00> : vector<16x256xf32>
    %30 = tpu.matmul %3, %29, %cst_12 {dimension_numbers = #tpu.dot_dimension_numbers<[1], [0], [0], [1], [0, 0, 1, 1], [], []>} : vector<16x128xbf16>, vector<128x256xbf16>, vector<16x256xf32> -> vector<16x256xf32>
    %31 = vector.broadcast %4 : vector<16x1xf32> to vector<16x256xf32>
    %32 = arith.addf %30, %31 : vector<16x256xf32>
    %c0_13 = arith.constant 0 : index
    %c0_14 = arith.constant 0 : index
    %c0_15 = arith.constant 0 : index
    %33 = vector.load %arg5[%c0_13, %c0_14, %c0_15] : memref<1x16x256xf32, #tpu.memory_space<vmem>>, vector<1x16x256xf32>
    %34 = vector.shape_cast %33 : vector<1x16x256xf32> to vector<16x256xf32>
    %35 = vector.shape_cast %32 : vector<16x256xf32> to vector<1x16x256xf32>
    tpu.vector_store %arg5[%c0_13, %c0_14, %c0_15], %35 {strides = array<i32>} : memref<1x16x256xf32, #tpu.memory_space<vmem>>, vector<1x16x256xf32>,
    return
  }
  func.func @transform_0(%arg0: i32) -> (i32, i32, i32) {
    %c0_i32 = arith.constant 0 : i32
    %c0_i32_0 = arith.constant 0 : i32
    %c0_i32_1 = arith.constant 0 : i32
    return %arg0, %c0_i32, %c0_i32_0 : i32, i32, i32
  }
  func.func @transform_1(%arg0: i32) -> (i32, i32) {
    %c0_i32 = arith.constant 0 : i32
    %c0_i32_0 = arith.constant 0 : i32
    %c0_i32_1 = arith.constant 0 : i32
    return %c0_i32, %c0_i32_0 : i32, i32
  }
  func.func @transform_2(%arg0: i32) -> (i32, i32) {
    %c0_i32 = arith.constant 0 : i32
    %c0_i32_0 = arith.constant 0 : i32
    %c0_i32_1 = arith.constant 0 : i32
    return %c0_i32, %c0_i32_0 : i32, i32
  }
  func.func @transform_3(%arg0: i32) -> (i32, i32) {
    %c0_i32 = arith.constant 0 : i32
    %c0_i32_0 = arith.constant 0 : i32
    %c0_i32_1 = arith.constant 0 : i32
    return %c0_i32, %c0_i32_0 : i32, i32
  }
  func.func @transform_4(%arg0: i32) -> (i32, i32, i32) {
    %c0_i32 = arith.constant 0 : i32
    %c0_i32_0 = arith.constant 0 : i32
    %c0_i32_1 = arith.constant 0 : i32
    return %arg0, %c0_i32, %c0_i32_0 : i32, i32, i32
  }
}

</mosaic_0001>

<bundles_post_ra>
// kernel: tpu_custom_call.1
= control target key start
LH: loop header
LB: loop body
LE: loop exit
PB: predicated region body
PF: predicated region fallthrough
CT: control target
= control target key end

     0   :  { %9 = vsyncpa [#allocation3], 0  ;;  %s2761_s0 = inlined_call_operand.vmem [shape: bf16[2,16,256], index: 0, kind: input, shape index: {}]   ;;  %s2762_s1 = inlined_call_operand.vmem [shape: bf16[384,16], index: 1, kind: input, shape index: {}]   ;;  %s2763_s2 = inlined_call_operand.vmem [shape: bf16[16,128], index: 2, kind: input, shape index: {}]   ;;  %s2764_s3 = inlined_call_operand.vmem [shape: f32[16,1], index: 3, kind: input, shape index: {}]   ;;  %s2765_s4 = inlined_call_operand.hbm [shape: f32[2,16,256], index: 4, kind: output, shape index: {}]  }
   0x1   :  { %11 = vsyncpa [#allocation3 + $0x1], 0  ;;  %s2011_s15 = smov 0   ;;  %s2013_s16 = smov 0  }
   0x2   :  { %s2015_s17 = smov 0   ;;  %s2017_s18 = smov 0  }
   0x3 LB: > { %s2032_s19 = sadd.s32 4294967295, %s1980_s18   ;;  %s1675_s20 = sadd.s32 4294967294, %s1980_s18   ;;  %s1980_s18 = sphi %s2017_s18, %s2906_s18   ;;  %s1976_s17 = sphi %s2015_s17, %s2905_s17   ;;  %s1972_s16 = sphi %s2013_s16, %s2904_s16   ;;  %s1968_s15 = sphi %s2011_s15, %s2903_s15  }
   0x4   : > { %s2036_s21 = sadd.s32 1, %s1980_s18   ;;  %s113_s22 = sadd.s32 1, %s1976_s17 }
   0x5   : > { %s110_s23 = ssub.s32 %s1980_s18, %s2036_s21  ;;  %p123_p0 = scmp.ne.s32.totalorder %s1976_s17, %s1972_s16 }
   0x6   : > { %p111_p1 = scmp.eq.s32.totalorder %s110_s23, 0  ;;  %p124_p2 = scmp.eq.s32.totalorder %s2032_s19, 1 }
   0x7   : > { %p129_p3 = scmp.ne.s32.totalorder %s1972_s16, %s1968_s15  ;;  %p130_p4 = scmp.eq.s32.totalorder %s1675_s20, 1 }
   0x8   : > { %s2047_s24 = scalar_select %p111_p1, %s1976_s17, %s113_s22  }
   0x9   : > { %p2049_p5 = por %p124_p2, %p123_p0  ;;  %p2053_p6 = por %p130_p4, %p129_p3 }
   0xa   : > { %p1678_p7 = scmp.ge.s32.totalorder %s1980_s18, 1  ;;  %p165_p8 = scmp.lt.s32.totalorder %s1980_s18, 3 }
   0xc   : > { %p166_p9 = pnand %p1678_p7, %p165_p8 }
   0xe   : > { %169 = sbr.rel (%p166_p9) target bundleno = 1465 (0x5b9), region = 36 }
  0x15   : > { %p191_p10 = scmp.lt.s32.totalorder %s2032_s19, 1  ;;  %v2766_v0 = vmov 0   ;;  %v1797_v3 = vld [vmem:[%s2762_s1] sm:$0xff]   ;;  %vm381_vm0 = vcmask 130048   ;;  %v1798_v4 = vld [vmem:[%s2762_s1 + $0x8] sm:$0xff]   ;;  %v1799_v5 = vld [vmem:[%s2762_s1 + $0x10] sm:$0xff]  }
  0x16   : > { %486 = vmatprep.mubr.bf16.mxu0 %v2766_v0  ;;  %706 = vmatprep.mubr.bf16.mxu1 %v2766_v0  ;;  %v1800_v6 = vld [vmem:[%s2762_s1 + $0x18] sm:$0xff]   ;;  %v1801_v7 = vld [vmem:[%s2762_s1 + $0x20] sm:$0xff]   ;;  %v1802_v8 = vld [vmem:[%s2762_s1 + $0x28] sm:$0xff]   ;;  %vm1235_vm1 = vcmask 261120   ;;  %s188_s9 = sand.u32 1, %s1972_s16   ;;  %s1747_s13 = sshll.u32 %s2032_s19, 9 }
  0x17   : > { %s192_s27 = scalar_select %p191_p10, %s2032_s19, 1  ;;  %v1803_v9 = vld [vmem:[%s2762_s1 + $0x30] sm:$0xff]   ;;  %v1804_v10 = vld [vmem:[%s2762_s1 + $0x38] sm:$0xff]   ;;  %v1805_v11 = vld [vmem:[%s2762_s1 + $0x40] sm:$0xff]  }
  0x18   : > { %v1806_v12 = vld [vmem:[%s2762_s1 + $0x48] sm:$0xff]   ;;  %v1807_v13 = vld [vmem:[%s2762_s1 + $0x50] sm:$0xff]   ;;  %v1808_v14 = vld [vmem:[%s2762_s1 + $0x58] sm:$0xff]   ;;  %s1679_s10 = sshll.u32 %s188_s9, 5  ;;  %s2718_s22 = scalar_lea.hbm %s2765_s4, %s1747_s13 }
  0x19   : > { %s1746_s28 = sshll.u32 %s192_s27, 4  ;;  %v1809_v15 = vld [vmem:[%s2762_s1 + $0x60] sm:$0xff]   ;;  %v1810_v16 = vld [vmem:[%s2762_s1 + $0x68] sm:$0xff]   ;;  %v1811_v17 = vld [vmem:[%s2762_s1 + $0x70] sm:$0xff]   ;;  %s190_s11 = scalar_lea.vmem [#allocation2], %s1679_s10 }
  0x1a   : > { %s195_s5 = scalar_lea.vmem %s2761_s0, %s1746_s28  ;;  %v1812_v18 = vld [vmem:[%s2762_s1 + $0x78] sm:$0xff]   ;;  %v1813_v19 = vld [vmem:[%s2762_s1 + $0x80] sm:$0xff]   ;;  %v1819_v21 = vld [vmem:[%s2762_s1 + $0xb0] sm:$0xff]   ;;  %s1613_s12 = sshll.u32 %s190_s11, 4  ;;  %s2713_s12 = int_to_ptr.vmem [resolvable:$true] %s1613_s12 }
  0x1b   : > { %v1794_v1 = vld [vmem:[%s195_s5 + $0x4] ss:$8 sps:$4 sm:$0xff]   ;;  %v1796_v2 = vld [vmem:[%s195_s5] ss:$8 sps:$4 sm:$0xff]   ;;  %v1820_v28 = vld [vmem:[%s2762_s1 + $0xb8] sm:$0xff]   ;;  %s2720_s19 = scalar_lea.sflag [#allocation3], %s188_s9 }
  0x1c   : > { %454 = vmatprep.subr.bf16.mxu0 %v1794_v1  ;;  %1748 = vmatprep.subr.bf16.mxu1 %v1794_v1  ;;  %v1814_v27 = vld [vmem:[%s2762_s1 + $0x88] sm:$0xff]   ;;  %v1815_v35 = vld [vmem:[%s2762_s1 + $0x90] sm:$0xff]   ;;  %v1816_v42 = vld [vmem:[%s2762_s1 + $0x98] sm:$0xff]   ;;  %s1918_s23 = scalar_lea.vmem %s2713_s12, 512  ;;  %s1983_s27 = smov [#allocation2]  }
  0x1d   : > { %455 = vmatpush1.bf16.msra.mxu0 %v1796_v2  ;;  %1749 = vmatpush1.bf16.msra.mxu1 %v1796_v2  ;;  %v1817_v49 = vld [vmem:[%s2762_s1 + $0xa0] sm:$0xff]   ;;  %v1818_v56 = vld [vmem:[%s2762_s1 + $0xa8] sm:$0xff]   ;;  %p1919_p11 = scmp.ne.s32.totalorder %s2713_s12, %s1918_s23  ;;  %s1922_s28 = sshll.u32 %s1983_s27, 4  ;;  %s1923_s28 = int_to_ptr.vmem [resolvable:$false] %s1922_s28 }
  0x1e   : > { %s1924_s29 = scalar_lea.vmem %s1923_s28, 1024  ;;  %p1925_p0 = scmp.lt.s32.totalorder %s2713_s12, %s1923_s28 }
  0x1f   : > { %p1920_p12 = pnand %p1919_p11, %p2049_p5  ;;  %p1926_p1 = scmp.lt.s32.totalorder %s1924_s29, %s1918_s23 }
  0x20   : > { %1708 = vmatmul.mubr.msk.bf16.vlgmr.msra.gmra.mrb[0].mxu0 %vm381_vm0, %v1797_v3  ;;  %1730 = vmatmul.mubr.msk.bf16.vlgmr.msra.gmra.mrb[0].mxu1 %vm381_vm0, %v1819_v21 }
  0x21   : > { %496 = vmatprep.mubr.bf16.mxu0 %v2766_v0  ;;  %716 = vmatprep.mubr.bf16.mxu1 %v2766_v0  ;;  %p1921_p13 = pneg %p1920_p12  ;;  %p1927_p2 = por %p1926_p1, %p1925_p0 }
  0x23   : > { %p1928_p3 = pnand %p1927_p2, %p1921_p13 }
  0x28   : > { %1709 = vmatmul.mubr.msk.bf16.gmra.mrb[4].mxu0 %vm381_vm0, %v1798_v4  ;;  %1731 = vmatmul.mubr.msk.bf16.gmra.mrb[4].mxu1 %vm381_vm0, %v1820_v28 }
  0x29   : > { %506 = vmatprep.mubr.bf16.mxu0 %v2766_v0 }
  0x30   : > { %1710 = vmatmul.mubr.msk.bf16.gmra.mrb[8].mxu0 %vm381_vm0, %v1799_v5 }
  0x31   : > { %516 = vmatprep.mubr.bf16.mxu0 %v2766_v0 }
  0x38   : > { %1711 = vmatmul.mubr.msk.bf16.gmra.mrb[12].mxu0 %vm381_vm0, %v1800_v6 }
  0x39   : > { %526 = vmatprep.mubr.bf16.mxu0 %v2766_v0 }
  0x40   : > { %1712 = vmatmul.mubr.msk.bf16.gmra.mrb[16].mxu0 %vm381_vm0, %v1801_v7 }
  0x41   : > { %536 = vmatprep.mubr.bf16.mxu0 %v2766_v0 }
  0x48   : > { %1713 = vmatmul.mubr.msk.bf16.gmra.mrb[20].mxu0 %vm381_vm0, %v1802_v8 }
  0x49   : > { %546 = vmatprep.mubr.bf16.mxu0 %v2766_v0 }
  0x50   : > { %1714 = vmatmul.mubr.msk.bf16.gmra.mrb[24].mxu0 %vm381_vm0, %v1803_v9 }
  0x51   : > { %556 = vmatprep.mubr.bf16.mxu0 %v2766_v0 }
  0x58   : > { %1715 = vmatmul.mubr.msk.bf16.gmra.mrb[28].mxu0 %vm381_vm0, %v1804_v10 }
  0x59   : > { %566 = vmatprep.mubr.bf16.mxu0 %v2766_v0 }
  0x60   : > { %1716 = vmatmul.mubr.msk.bf16.gmra.mrb[32].mxu0 %vm381_vm0, %v1805_v11 }
  0x61   : > { %576 = vmatprep.mubr.bf16.mxu0 %v2766_v0 }
  0x68   : > { %1717 = vmatmul.mubr.msk.bf16.gmra.mrb[36].mxu0 %vm381_vm0, %v1806_v12 }
  0x69   : > { %586 = vmatprep.mubr.bf16.mxu0 %v2766_v0 }
  0x70   : > { %1718 = vmatmul.mubr.msk.bf16.gmra.mrb[40].mxu0 %vm381_vm0, %v1807_v13 }
  0x71   : > { %596 = vmatprep.mubr.bf16.mxu0 %v2766_v0 }
  0x78   : > { %1719 = vmatmul.mubr.msk.bf16.gmra.mrb[44].mxu0 %vm381_vm0, %v1808_v14 }
  0x79   : > { %606 = vmatprep.mubr.bf16.mxu0 %v2766_v0 }
  0x80   : > { %1720 = vmatmul.mubr.msk.bf16.gmra.mrb[48].mxu0 %vm381_vm0, %v1809_v15 }
  0x81   : > { %616 = vmatprep.mubr.bf16.mxu0 %v2766_v0 }
  0x88   : > { %1721 = vmatmul.mubr.msk.bf16.gmra.mrb[52].mxu0 %vm381_vm0, %v1810_v16 }
  0x89   : > { %626 = vmatprep.mubr.bf16.mxu0 %v2766_v0 }
  0x90   : > { %1722 = vmatmul.mubr.msk.bf16.gmra.mrb[56].mxu0 %vm381_vm0, %v1811_v17 }
  0x91   : > { %636 = vmatprep.mubr.bf16.mxu0 %v2766_v0 }
  0x98   : > { %1723 = vmatmul.mubr.msk.bf16.gmra.mrb[60].mxu0 %vm381_vm0, %v1812_v18 }
  0x99   : > { %646 = vmatprep.mubr.bf16.mxu0 %v2766_v0 }
  0xa0   : > { %1724 = vmatmul.mubr.msk.bf16.gmra.mrb[64].mxu0 %vm381_vm0, %v1813_v19 }
  0xa1   : > { %656 = vmatprep.mubr.bf16.mxu0 %v2766_v0 }
  0xa8   : > { %1725 = vmatmul.mubr.msk.bf16.gmra.mrb[68].mxu0 %vm381_vm0, %v1814_v27 }
  0xa9   : > { %666 = vmatprep.mubr.bf16.mxu0 %v2766_v0 }
  0xb0   : > { %1726 = vmatmul.mubr.msk.bf16.gmra.mrb[72].mxu0 %vm381_vm0, %v1815_v35 }
  0xb1   : > { %676 = vmatprep.mubr.bf16.mxu0 %v2766_v0 }
  0xb8   : > { %1727 = vmatmul.mubr.msk.bf16.gmra.mrb[76].mxu0 %vm381_vm0, %v1816_v42 }
  0xb9   : > { %686 = vmatprep.mubr.bf16.mxu0 %v2766_v0 }
  0xc0   : > { %1728 = vmatmul.mubr.msk.bf16.gmra.mrb[80].mxu0 %vm381_vm0, %v1817_v49 }
  0xc1   : > { %696 = vmatprep.mubr.bf16.mxu0 %v2766_v0 }
  0xc8   : > { %1729 = vmatmul.mubr.msk.bf16.gmra.mrb[84].mxu0 %vm381_vm0, %v1818_v56 }
  0xf3   : > { %v2149_v20 = vpop.f32.mrb[0].mxu0 }
  0xf4   : > { %2805 = vst [vmem:[#allocation5_spill] sm:$0xff] %v2149_v20  ;;  %v2155_v22 = vpop.f32.mrb[1].mxu0 }
  0xf5   : > { %v2158_v23 = vpop.f32.mrb[2].mxu0 }
  0xf6   : > { %2806 = vst [vmem:[#allocation6_spill] sm:$0xff] %v2158_v23  ;;  %v2163_v25 = vpop.f32.mrb[3].mxu0 }
  0xfb   : > { %v2174_v29 = vpop.f32.mrb[4].mxu0 }
  0xfc   : > { %2807 = vst [vmem:[#allocation7_spill] sm:$0xff] %v2174_v29  ;;  %v2177_v30 = vpop.f32.mrb[5].mxu0 }
  0xfd   : > { %2808 = vst [vmem:[#allocation8_spill] sm:$0xff] %v2177_v30  ;;  %v2180_v31 = vpop.f32.mrb[6].mxu0 }
  0xfe   : > { %2809 = vst [vmem:[#allocation9_spill] sm:$0xff] %v2180_v31  ;;  %v2185_v33 = vpop.f32.mrb[7].mxu0 }
  0xff   : > { %2810 = vst [vmem:[#allocation10_spill] sm:$0xff] %v2185_v33 }
 0x103   : > { %v2192_v36 = vpop.f32.mrb[8].mxu0 }
 0x104   : > { %2811 = vst [vmem:[#allocation11_spill] sm:$0xff] %v2192_v36  ;;  %v2195_v37 = vpop.f32.mrb[9].mxu0 }
 0x105   : > { %2812 = vst [vmem:[#allocation12_spill] sm:$0xff] %v2195_v37  ;;  %v2198_v38 = vpop.f32.mrb[10].mxu0 }
 0x106   : > { %2813 = vst [vmem:[#allocation13_spill] sm:$0xff] %v2198_v38  ;;  %v2202_v40 = vpop.f32.mrb[11].mxu0 }
 0x107   : > { %2814 = vst [vmem:[#allocation14_spill] sm:$0xff] %v2202_v40 }
 0x10b   : > { %v2209_v43 = vpop.f32.mrb[12].mxu0 }
 0x10c   : > { %2815 = vst [vmem:[#allocation15_spill] sm:$0xff] %v2209_v43  ;;  %v2212_v44 = vpop.f32.mrb[13].mxu0 }
 0x10d   : > { %2816 = vst [vmem:[#allocation16_spill] sm:$0xff] %v2212_v44  ;;  %v2215_v45 = vpop.f32.mrb[14].mxu0  ;;  %v2546_v44 = vpop.f32.mrb[0].mxu1 }
 0x10e   : > { %2817 = vst [vmem:[#allocation17_spill] sm:$0xff] %v2215_v45  ;;  %v2219_v47 = vpop.f32.mrb[15].mxu0 }
 0x10f   : > { %2818 = vst [vmem:[#allocation18_spill] sm:$0xff] %v2219_v47  ;;  %v2548_v47 = vpop.f32.mrb[1].mxu1 }
 0x110   : > { %v2550_v36 = vpop.f32.mrb[2].mxu1 }
 0x113   : > { %v2226_v50 = vpop.f32.mrb[16].mxu0 }
 0x114   : > { %2819 = vst [vmem:[#allocation19_spill] sm:$0xff] %v2226_v50  ;;  %v2229_v51 = vpop.f32.mrb[17].mxu0 }
 0x115   : > { %2820 = vst [vmem:[#allocation20_spill] sm:$0xff] %v2229_v51  ;;  %v2232_v52 = vpop.f32.mrb[18].mxu0 }
 0x116   : > { %2821 = vst [vmem:[#allocation21_spill] sm:$0xff] %v2232_v52  ;;  %v2236_v54 = vpop.f32.mrb[19].mxu0 }
 0x117   : > { %2822 = vst [vmem:[#allocation22_spill] sm:$0xff] %v2236_v54 }
 0x11b   : > { %v2243_v57 = vpop.f32.mrb[20].mxu0 }
 0x11c   : > { %2823 = vst [vmem:[#allocation23_spill] sm:$0xff] %v2243_v57  ;;  %v2246_v58 = vpop.f32.mrb[21].mxu0 }
 0x11d   : > { %2824 = vst [vmem:[#allocation24_spill] sm:$0xff] %v2246_v58  ;;  %v2248_v59 = vpop.f32.mrb[22].mxu0 }
 0x11e   : > { %2825 = vst [vmem:[#allocation25_spill] sm:$0xff] %v2248_v59  ;;  %v2252_v61 = vpop.f32.mrb[23].mxu0 }
 0x11f   : > { %2826 = vst [vmem:[#allocation26_spill] sm:$0xff] %v2252_v61 }
 0x123   : > { %v2256_v63 = vpop.f32.mrb[24].mxu0 }
 0x124   : > { %2827 = vst [vmem:[#allocation27_spill] sm:$0xff] %v2256_v63  ;;  %v2258_v1 = vpop.f32.mrb[25].mxu0 }
 0x125   : > { %2828 = vst [vmem:[#allocation28_spill] sm:$0xff] %v2258_v1  ;;  %v2260_v2 = vpop.f32.mrb[26].mxu0 }
 0x126   : > { %2829 = vst [vmem:[#allocation29_spill] sm:$0xff] %v2260_v2  ;;  %v2264_v4 = vpop.f32.mrb[27].mxu0 }
 0x127   : > { %2830 = vst [vmem:[#allocation30_spill] sm:$0xff] %v2264_v4 }
 0x12b   : > { %v2268_v6 = vpop.f32.mrb[28].mxu0 }
 0x12c   : > { %2831 = vst [vmem:[#allocation31_spill] sm:$0xff] %v2268_v6  ;;  %v2270_v7 = vpop.f32.mrb[29].mxu0 }
 0x12d   : > { %2832 = vst [vmem:[#allocation32_spill] sm:$0xff] %v2270_v7  ;;  %v2272_v8 = vpop.f32.mrb[30].mxu0 }
 0x12e   : > { %2833 = vst [vmem:[#allocation33_spill] sm:$0xff] %v2272_v8  ;;  %v2276_v10 = vpop.f32.mrb[31].mxu0 }
 0x12f   : > { %2834 = vst [vmem:[#allocation34_spill] sm:$0xff] %v2276_v10 }
 0x133   : > { %v2280_v12 = vpop.f32.mrb[32].mxu0 }
 0x134   : > { %v2282_v13 = vpop.f32.mrb[33].mxu0 }
 0x135   : > { %v2284_v14 = vpop.f32.mrb[34].mxu0  ;;  %v727_v15 = vmax.f32 %v2280_v12, %v2282_v13 }
 0x136   : > { %v2288_v16 = vpop.f32.mrb[35].mxu0 }
 0x137   : > { %728 = vmax.xlane.f32.xlu0 %v727_v15  ;;  %v730_v17 = vmax.f32 %v2284_v14, %v2288_v16 }
 0x13b   : > { %731 = vmax.xlane.f32.xlu0 %v730_v17  ;;  %v2292_v18 = vpop.f32.mrb[36].mxu0 }
 0x13c   : > { %v2294_v19 = vpop.f32.mrb[37].mxu0 }
 0x13d   : > { %v2296_v21 = vpop.f32.mrb[38].mxu0  ;;  %v733_v27 = vmax.f32 %v2292_v18, %v2294_v19 }
 0x13e   : > { %v2300_v28 = vpop.f32.mrb[39].mxu0 }
 0x13f   : > { %734 = vmax.xlane.f32.xlu1 %v733_v27  ;;  %v736_v35 = vmax.f32 %v2296_v21, %v2300_v28 }
 0x143   : > { %737 = vmax.xlane.f32.xlu1 %v736_v35  ;;  %v2304_v42 = vpop.f32.mrb[40].mxu0 }
 0x144   : > { %v2306_v49 = vpop.f32.mrb[41].mxu0 }
 0x145   : > { %v2308_v56 = vpop.f32.mrb[42].mxu0  ;;  %v739_v15 = vmax.f32 %v2304_v42, %v2306_v49 }
 0x146   : > { %v2312_v17 = vpop.f32.mrb[43].mxu0 }
 0x147   : > { %740 = vmax.xlane.f32.xlu0 %v739_v15  ;;  %v742_v9 = vmax.f32 %v2308_v56, %v2312_v17 }
 0x149   : > { %743 = vmax.xlane.f32.xlu1 %v742_v9 }
 0x14b   : > { %v2316_v27 = vpop.f32.mrb[44].mxu0 }
 0x14c   : > { %v2318_v11 = vpop.f32.mrb[45].mxu0 }
 0x14d   : > { %v2320_v35 = vpop.f32.mrb[46].mxu0  ;;  %v745_v3 = vmax.f32 %v2316_v27, %v2318_v11 }
 0x14e   : > { %v2324_v5 = vpop.f32.mrb[47].mxu0 }
 0x14f   : > { %746 = vmax.xlane.f32.xlu0 %v745_v3  ;;  %v748_v60 = vmax.f32 %v2320_v35, %v2324_v5 }
 0x151   : > { %749 = vmax.xlane.f32.xlu1 %v748_v60 }
 0x153   : > { %v2328_v15 = vpop.f32.mrb[48].mxu0 }
 0x154   : > { %v2330_v62 = vpop.f32.mrb[49].mxu0 }
 0x155   : > { %v2332_v9 = vpop.f32.mrb[50].mxu0  ;;  %v751_v53 = vmax.f32 %v2328_v15, %v2330_v62 }
 0x156   : > { %v2336_v55 = vpop.f32.mrb[51].mxu0 }
 0x157   : > { %752 = vmax.xlane.f32.xlu0 %v751_v53  ;;  %v754_v46 = vmax.f32 %v2332_v9, %v2336_v55 }
 0x159   : > { %755 = vmax.xlane.f32.xlu1 %v754_v46 }
 0x15b   : > { %v2340_v3 = vpop.f32.mrb[52].mxu0 }
 0x15c   : > { %v2342_v48 = vpop.f32.mrb[53].mxu0 }
 0x15d   : > { %v2344_v60 = vpop.f32.mrb[54].mxu0  ;;  %v757_v39 = vmax.f32 %v2340_v3, %v2342_v48 }
 0x15e   : > { %v2348_v0 = vpop.f32.mrb[55].mxu0 }
 0x15f   : > { %758 = vmax.xlane.f32.xlu0 %v757_v39  ;;  %v760_v41 = vmax.f32 %v2344_v60, %v2348_v0 }
 0x161   : > { %761 = vmax.xlane.f32.xlu1 %v760_v41 }
 0x163   : > { %v2352_v53 = vpop.f32.mrb[56].mxu0 }
 0x164   : > { %v2354_v32 = vpop.f32.mrb[57].mxu0 }
 0x165   : > { %v2356_v46 = vpop.f32.mrb[58].mxu0  ;;  %v763_v34 = vmax.f32 %v2352_v53, %v2354_v32 }
 0x166   : > { %v2360_v24 = vpop.f32.mrb[59].mxu0 }
 0x167   : > { %764 = vmax.xlane.f32.xlu0 %v763_v34  ;;  %v766_v26 = vmax.f32 %v2356_v46, %v2360_v24 }
 0x169   : > { %767 = vmax.xlane.f32.xlu1 %v766_v26 }
 0x16b   : > { %v2364_v39 = vpop.f32.mrb[60].mxu0 }
 0x16c   : > { %v2366_v6 = vpop.f32.mrb[61].mxu0 }
 0x16d   : > { %v2368_v41 = vpop.f32.mrb[62].mxu0  ;;  %v769_v8 = vmax.f32 %v2364_v39, %v2366_v6 }
 0x16e   : > { %v2372_v7 = vpop.f32.mrb[63].mxu0 }
 0x16f   : > { %770 = vmax.xlane.f32.xlu0 %v769_v8  ;;  %v772_v10 = vmax.f32 %v2368_v41, %v2372_v7 }
 0x171   : > { %773 = vmax.xlane.f32.xlu1 %v772_v10 }
 0x173   : > { %v648_v2 = vpop.f32.mrb[64].mxu0 }
 0x174   : > { %v650_v57 = vpop.f32.mrb[65].mxu0 }
 0x175   : > { %v652_v58 = vpop.f32.mrb[66].mxu0 }
 0x176   : > { %v983_v50 = vpack.c.bf16 %v652_v58, %v648_v2  ;;  %v654_v52 = vpop.f32.mrb[67].mxu0 }
 0x177   : > { %v984_v10 = vpack.c.bf16 %v654_v52, %v650_v57 }
 0x179   : > { %1015 = vmatprep.subr.bf16.mxu1 %v984_v10 }
 0x17a   : > { %1016 = vmatpush1.bf16.xpose.msra.mxu1 %v983_v50 }
 0x1c4   : > { %v729_v34 = vpop.xlane.xlu0 %728 }
 0x1c5   : > { %v775_v63 = vsub.f32 %v2280_v12, %v729_v34  ;;  %v776_v26 = vsub.f32 %v2282_v13, %v729_v34 }
 0x1c7   : > { %v807_v1 = vmul.f32 1.442695, %v775_v63  ;;  %v809_v4 = vmul.f32 1.442695, %v776_v26 }
 0x1c8   : > { %v732_v59 = vpop.xlane.xlu0 %731 }
 0x1c9   : > { %1822 = vpow2.f32 %v807_v1  ;;  %v777_v61 = vsub.f32 %v2284_v14, %v732_v59  ;;  %v778_v8 = vsub.f32 %v2288_v16, %v732_v59 }
 0x1ca   : > { %1824 = vpow2.f32 %v809_v4 }
 0x1cb   : > { %v811_v51 = vmul.f32 1.442695, %v777_v61  ;;  %v813_v54 = vmul.f32 1.442695, %v778_v8 }
 0x1cc   : > { %v735_v12 = vpop.xlane.xlu1 %734 }
 0x1cd   : > { %1826 = vpow2.f32 %v811_v51  ;;  %v779_v63 = vsub.f32 %v2292_v18, %v735_v12  ;;  %v780_v13 = vsub.f32 %v2294_v19, %v735_v12 }
 0x1ce   : > { %1828 = vpow2.f32 %v813_v54 }
 0x1cf   : > { %v815_v1 = vmul.f32 1.442695, %v779_v63  ;;  %v817_v34 = vmul.f32 1.442695, %v780_v13 }
 0x1d0   : > { %v738_v14 = vpop.xlane.xlu1 %737 }
 0x1d1   : > { %1830 = vpow2.f32 %v815_v1  ;;  %v781_v58 = vsub.f32 %v2296_v21, %v738_v14  ;;  %v782_v59 = vsub.f32 %v2300_v28, %v738_v14 }
 0x1d2   : > { %1832 = vpow2.f32 %v817_v34 }
 0x1d3   : > { %v2384_v52 = vpop.eup %1822  ;;  %v819_v57 = vmul.f32 1.442695, %v781_v58  ;;  %v821_v61 = vmul.f32 1.442695, %v782_v59 }
 0x1d4   : > { %v2386_v51 = vpop.eup %1824  ;;  %v741_v2 = vpop.xlane.xlu0 %740 }
 0x1d5   : > { %1834 = vpow2.f32 %v819_v57  ;;  %v783_v50 = vsub.f32 %v2304_v42, %v741_v2  ;;  %v784_v54 = vsub.f32 %v2306_v49, %v741_v2  ;;  %v871_v4 = vadd.f32 %v2386_v51, %v2384_v52 }
 0x1d6   : > { %1836 = vpow2.f32 %v821_v61  ;;  %v744_v16 = vpop.xlane.xlu1 %743 }
 0x1d7   : > { %v2392_v18 = vpop.eup %1826  ;;  %v823_v19 = vmul.f32 1.442695, %v783_v50  ;;  %v825_v21 = vmul.f32 1.442695, %v784_v54  ;;  %v785_v28 = vsub.f32 %v2308_v56, %v744_v16  ;;  %v786_v26 = vsub.f32 %v2312_v17, %v744_v16  ;;  %872 = vadd.xlane.f32.xlu0 %v871_v4 }
 0x1d8   : > { %v2396_v8 = vpop.eup %1828 }
 0x1d9   : > { %1838 = vpow2.f32 %v823_v19  ;;  %v827_v42 = vmul.f32 1.442695, %v785_v28  ;;  %v829_v10 = vmul.f32 1.442695, %v786_v26  ;;  %v874_v49 = vadd.f32 %v2396_v8, %v2392_v18 }
 0x1da   : > { %1840 = vpow2.f32 %v825_v21 }
 0x1db   : > { %v2400_v12 = vpop.eup %1830  ;;  %1842 = vpow2.f32 %v827_v42  ;;  %875 = vadd.xlane.f32.xlu1 %v874_v49 }
 0x1dc   : > { %v2402_v63 = vpop.eup %1832  ;;  %1844 = vpow2.f32 %v829_v10  ;;  %v747_v56 = vpop.xlane.xlu0 %746 }
 0x1dd   : > { %v787_v17 = vsub.f32 %v2316_v27, %v747_v56  ;;  %v788_v13 = vsub.f32 %v2318_v11, %v747_v56  ;;  %v877_v1 = vadd.f32 %v2402_v63, %v2400_v12 }
 0x1de   : > { %v750_v34 = vpop.xlane.xlu1 %749 }
 0x1df   : > { %v2408_v14 = vpop.eup %1834  ;;  %v831_v58 = vmul.f32 1.442695, %v787_v17  ;;  %v833_v59 = vmul.f32 1.442695, %v788_v13  ;;  %v789_v57 = vsub.f32 %v2320_v35, %v750_v34  ;;  %v790_v61 = vsub.f32 %v2324_v5, %v750_v34  ;;  %878 = vadd.xlane.f32.xlu0 %v877_v1  ;;  %v658_v13 = vpop.f32.mrb[68].mxu0 }
 0x1e0   : > { %v2412_v2 = vpop.eup %1836  ;;  %v660_v1 = vpop.f32.mrb[69].mxu0 }
 0x1e1   : > { %1846 = vpow2.f32 %v831_v58  ;;  %v835_v50 = vmul.f32 1.442695, %v789_v57  ;;  %v837_v27 = vmul.f32 1.442695, %v790_v61  ;;  %v880_v11 = vadd.f32 %v2412_v2, %v2408_v14  ;;  %v662_v34 = vpop.f32.mrb[70].mxu0 }
 0x1e2   : > { %1848 = vpow2.f32 %v833_v59  ;;  %v664_v59 = vpop.f32.mrb[71].mxu0 }
 0x1e3   : > { %v2416_v54 = vpop.eup %1838  ;;  %1850 = vpow2.f32 %v835_v50  ;;  %881 = vadd.xlane.f32.xlu1 %v880_v11 }
 0x1e4   : > { %v2418_v4 = vpop.eup %1840  ;;  %1852 = vpow2.f32 %v837_v27  ;;  %v753_v35 = vpop.xlane.xlu0 %752 }
 0x1e5   : > { %v2420_v16 = vpop.eup %1842  ;;  %v791_v5 = vsub.f32 %v2328_v15, %v753_v35  ;;  %v792_v19 = vsub.f32 %v2330_v62, %v753_v35  ;;  %v883_v21 = vadd.f32 %v2418_v4, %v2416_v54  ;;  %v985_v35 = vpack.c.bf16 %v662_v34, %v658_v13 }
 0x1e6   : > { %v2426_v28 = vpop.eup %1844  ;;  %v756_v26 = vpop.xlane.xlu1 %755 }
 0x1e7   : > { %v839_v42 = vmul.f32 1.442695, %v791_v5  ;;  %v841_v10 = vmul.f32 1.442695, %v792_v19  ;;  %v793_v49 = vsub.f32 %v2332_v9, %v756_v26  ;;  %v794_v56 = vsub.f32 %v2336_v55, %v756_v26  ;;  %884 = vadd.xlane.f32.xlu0 %v883_v21 }
 0x1e8   : > { %v886_v17 = vadd.f32 %v2426_v28, %v2420_v16  ;;  %v986_v9 = vpack.c.bf16 %v664_v59, %v660_v1 }
 0x1e9   : > { %1854 = vpow2.f32 %v839_v42  ;;  %v843_v15 = vmul.f32 1.442695, %v793_v49  ;;  %v845_v62 = vmul.f32 1.442695, %v794_v56  ;;  %v2448_v56 = vpop.f32.mrb[72].mxu0 }
 0x1ea   : > { %1856 = vpow2.f32 %v841_v10  ;;  %887 = vadd.xlane.f32.xlu1 %v886_v17  ;;  %1017 = vmatprep.subr.bf16.mxu1 %v986_v9  ;;  %v670_v17 = vpop.f32.mrb[73].mxu0 }
 0x1eb   : > { %v2432_v58 = vpop.eup %1846  ;;  %1858 = vpow2.f32 %v843_v15  ;;  %1018 = vmatpush1.bf16.xpose.msra.mxu1 %v985_v35  ;;  %v2452_v15 = vpop.f32.mrb[74].mxu0 }
 0x1ec   : > { %v2434_v57 = vpop.eup %1848  ;;  %1860 = vpow2.f32 %v845_v62  ;;  %v759_v55 = vpop.xlane.xlu0 %758 }
 0x1ed   : > { %v2436_v61 = vpop.eup %1850  ;;  %v795_v50 = vsub.f32 %v2340_v3, %v759_v55  ;;  %v796_v27 = vsub.f32 %v2342_v48, %v759_v55  ;;  %v889_v11 = vadd.f32 %v2434_v57, %v2432_v58  ;;  %v674_v1 = vpop.f32.mrb[75].mxu0 }
 0x1ee   : > { %v2442_v5 = vpop.eup %1852  ;;  %v762_v19 = vpop.xlane.xlu1 %761 }
 0x1ef   : > { %v847_v21 = vmul.f32 1.442695, %v795_v50  ;;  %v849_v26 = vmul.f32 1.442695, %v796_v27  ;;  %v797_v42 = vsub.f32 %v2344_v60, %v762_v19  ;;  %v798_v10 = vsub.f32 %v2348_v0, %v762_v19  ;;  %890 = vadd.xlane.f32.xlu0 %v889_v11 }
 0x1f0   : > { %v892_v3 = vadd.f32 %v2442_v5, %v2436_v61  ;;  %v988_v50 = vpack.c.bf16 %v674_v1, %v670_v17 }
 0x1f1   : > { %1862 = vpow2.f32 %v847_v21  ;;  %v851_v48 = vmul.f32 1.442695, %v797_v42  ;;  %v853_v49 = vmul.f32 1.442695, %v798_v10  ;;  %v2470_v10 = vpop.f32.mrb[76].mxu0 }
 0x1f2   : > { %1864 = vpow2.f32 %v849_v26  ;;  %893 = vadd.xlane.f32.xlu1 %v892_v3  ;;  %1064 = vmatprep.subr.bf16.mxu1 %v988_v50  ;;  %v2472_v3 = vpop.f32.mrb[77].mxu0 }
 0x1f3   : > { %v2450_v13 = vpop.eup %1854  ;;  %1866 = vpow2.f32 %v851_v48 }
 0x1f4   : > { %v2454_v60 = vpop.eup %1856  ;;  %1868 = vpow2.f32 %v853_v49  ;;  %v765_v0 = vpop.xlane.xlu0 %764 }
 0x1f5   : > { %v2458_v34 = vpop.eup %1858  ;;  %v799_v59 = vsub.f32 %v2352_v53, %v765_v0  ;;  %v800_v55 = vsub.f32 %v2354_v32, %v765_v0  ;;  %v895_v9 = vadd.f32 %v2454_v60, %v2450_v13 }
 0x1f6   : > { %v2464_v27 = vpop.eup %1860  ;;  %v768_v11 = vpop.xlane.xlu1 %767 }
 0x1f7   : > { %v855_v35 = vmul.f32 1.442695, %v799_v59  ;;  %v857_v19 = vmul.f32 1.442695, %v800_v55  ;;  %v801_v21 = vsub.f32 %v2356_v46, %v768_v11  ;;  %v802_v26 = vsub.f32 %v2360_v24, %v768_v11  ;;  %896 = vadd.xlane.f32.xlu0 %v895_v9  ;;  %v2476_v46 = vpop.f32.mrb[78].mxu0 }
 0x1f8   : > { %v898_v53 = vadd.f32 %v2464_v27, %v2458_v34  ;;  %v2480_v17 = vpop.f32.mrb[79].mxu0 }
 0x1f9   : > { %1870 = vpow2.f32 %v855_v35  ;;  %v859_v32 = vmul.f32 1.442695, %v801_v21  ;;  %v861_v42 = vmul.f32 1.442695, %v802_v26 }
 0x1fa   : > { %1872 = vpow2.f32 %v857_v19  ;;  %899 = vadd.xlane.f32.xlu1 %v898_v53 }
 0x1fb   : > { %v2474_v48 = vpop.eup %1862  ;;  %1874 = vpow2.f32 %v859_v32 }
 0x1fc   : > { %v2478_v24 = vpop.eup %1864  ;;  %1876 = vpow2.f32 %v861_v42  ;;  %v771_v49 = vpop.xlane.xlu0 %770 }
 0x1fd   : > { %v2482_v0 = vpop.eup %1866  ;;  %v803_v1 = vsub.f32 %v2364_v39, %v771_v49  ;;  %v804_v59 = vsub.f32 %v2366_v6, %v771_v49  ;;  %v901_v55 = vadd.f32 %v2478_v24, %v2474_v48  ;;  %v2498_v42 = vpop.f32.mrb[80].mxu0 }
 0x1fe   : > { %v2490_v50 = vpop.eup %1868  ;;  %v774_v11 = vpop.xlane.xlu1 %773 }
 0x1ff   : > { %v863_v19 = vmul.f32 1.442695, %v803_v1  ;;  %v865_v21 = vmul.f32 1.442695, %v804_v59  ;;  %902 = vadd.xlane.f32.xlu0 %v901_v55  ;;  %v805_v26 = vsub.f32 %v2368_v41, %v774_v11  ;;  %v806_v39 = vsub.f32 %v2372_v7, %v774_v11  ;;  %v2500_v49 = vpop.f32.mrb[81].mxu0 }
 0x200   : > { %v904_v6 = vadd.f32 %v2490_v50, %v2482_v0  ;;  %v2504_v1 = vpop.f32.mrb[82].mxu0 }
 0x201   : > { %1878 = vpow2.f32 %v863_v19  ;;  %v867_v53 = vmul.f32 1.442695, %v805_v26  ;;  %v869_v32 = vmul.f32 1.442695, %v806_v39  ;;  %v2510_v59 = vpop.f32.mrb[83].mxu0 }
 0x202   : > { %1880 = vpow2.f32 %v865_v21  ;;  %905 = vadd.xlane.f32.xlu1 %v904_v6  ;;  %v2522_v39 = vpop.f32.mrb[84].mxu0 }
 0x203   : > { %v2502_v9 = vpop.eup %1870  ;;  %1882 = vpow2.f32 %v867_v53  ;;  %v2524_v6 = vpop.f32.mrb[85].mxu0 }
 0x204   : > { %2835 = vst [vmem:[#allocation35_spill] sm:$0xff] %v2502_v9  ;;  %v2506_v41 = vpop.eup %1872  ;;  %1884 = vpow2.f32 %v869_v32  ;;  %v2528_v32 = vpop.f32.mrb[86].mxu0 }
 0x205   : > { %v2512_v55 = vpop.eup %1874  ;;  %v907_v11 = vadd.f32 %v2506_v41, %v2502_v9  ;;  %v2532_v35 = vpop.f32.mrb[87].mxu0 }
 0x206   : > { %v2518_v21 = vpop.eup %1876 }
 0x207   : > { %908 = vadd.xlane.f32.xlu0 %v907_v11  ;;  %v910_v26 = vadd.f32 %v2518_v21, %v2512_v55 }
 0x209   : > { %911 = vadd.xlane.f32.xlu1 %v910_v26  ;;  %v2554_v26 = vpop.f32.mrb[3].mxu1 }
 0x20a   : > { %v2558_v37 = vpop.f32.mrb[4].mxu1 }
 0x20b   : > { %v2526_v53 = vpop.eup %1878 }
 0x20c   : > { %2836 = vst [vmem:[#allocation36_spill] sm:$0xff] %v2526_v53  ;;  %v2530_v7 = vpop.eup %1880 }
 0x20d   : > { %2837 = vst [vmem:[#allocation37_spill] sm:$0xff] %v2530_v7  ;;  %v2534_v19 = vpop.eup %1882  ;;  %v913_v11 = vadd.f32 %v2530_v7, %v2526_v53 }
 0x20e   : > { %2838 = vst [vmem:[#allocation38_spill] sm:$0xff] %v2534_v19  ;;  %v2542_v43 = vpop.eup %1884 }
 0x20f   : > { %2839 = vst [vmem:[#allocation39_spill] sm:$0xff] %v2542_v43  ;;  %914 = vadd.xlane.f32.xlu0 %v913_v11  ;;  %v916_v45 = vadd.f32 %v2542_v43, %v2534_v19  ;;  %v2560_v11 = vpop.f32.mrb[5].mxu1 }
 0x210   : > { %v2562_v40 = vpop.f32.mrb[6].mxu1 }
 0x211   : > { %917 = vadd.xlane.f32.xlu1 %v916_v45  ;;  %v2564_v45 = vpop.f32.mrb[7].mxu1 }
 0x264   : > { %v873_v38 = vpop.xlane.xlu0 %872 }
 0x265   : > { %1886 = vrcp.f32 %v873_v38 }
 0x268   : > { %v876_v53 = vpop.xlane.xlu1 %875 }
 0x269   : > { %1888 = vrcp.f32 %v876_v53 }
 0x26c   : > { %v879_v19 = vpop.xlane.xlu0 %878 }
 0x26d   : > { %1890 = vrcp.f32 %v879_v19 }
 0x26f   : > { %v1887_v30 = vpop.eup %1886 }
 0x270   : > { %v882_v62 = vpop.xlane.xlu1 %881  ;;  %v935_v43 = vmul.f32 %v1887_v30, %v2384_v52  ;;  %v936_v29 = vmul.f32 %v1887_v30, %v2386_v51 }
 0x271   : > { %1892 = vrcp.f32 %v882_v62  ;;  %v2840_v62 = vpack.c.bf16 %v2452_v15, %v2448_v56  ;;  %v2842_v15 = vpack.c.bf16 %v2476_v46, %v2470_v10  ;;  %v2844_v46 = vpack.c.bf16 %v2504_v1, %v2498_v42 }
 0x273   : > { %v1889_v33 = vpop.eup %1888 }
 0x274   : > { %v937_v7 = vmul.f32 %v1889_v33, %v2392_v18  ;;  %v885_v20 = vpop.xlane.xlu0 %884  ;;  %v938_v23 = vmul.f32 %v1889_v33, %v2396_v8  ;;  %v2841_v18 = vpack.c.bf16 %v2480_v17, %v2472_v3 }
 0x275   : > { %1894 = vrcp.f32 %v885_v20 }
 0x276   : > { %v968_v31 = vpack.c.bf16 %v938_v23, %v936_v29  ;;  %v967_v38 = vpack.c.bf16 %v937_v7, %v935_v43 }
 0x277   : > { %v888_v9 = vpop.xlane.xlu1 %887  ;;  %v1891_v19 = vpop.eup %1890 }
 0x278   : > { %1896 = vrcp.f32 %v888_v9  ;;  %1047 = vmatprep.mubr.bf16.mxu1 %v968_v31  ;;  %v940_v33 = vmul.f32 %v1891_v19, %v2402_v63  ;;  %v939_v23 = vmul.f32 %v1891_v19, %v2400_v12  ;;  %v2843_v12 = vpack.c.bf16 %v2510_v59, %v2500_v49 }
 0x279   : > { %1048 = vmatmul.mubr.bf16.vlgmr.msra.gmra.mrb[8].mxu1 %v967_v38 }
 0x27a   : > { %1065 = vmatpush1.bf16.xpose.msra.mxu1 %v2840_v62 }
 0x27b   : > { %v1893_v52 = vpop.eup %1892  ;;  %1066 = vmatprep.subr.bf16.mxu1 %v2841_v18 }
 0x27c   : > { %v891_v30 = vpop.xlane.xlu0 %890  ;;  %v942_v20 = vmul.f32 %v1893_v52, %v2412_v2  ;;  %v941_v29 = vmul.f32 %v1893_v52, %v2408_v14 }
 0x27d   : > { %1898 = vrcp.f32 %v891_v30 }
 0x27e   : > { %v970_v31 = vpack.c.bf16 %v942_v20, %v940_v33  ;;  %v969_v43 = vpack.c.bf16 %v941_v29, %v939_v23 }
 0x27f   : > { %v894_v51 = vpop.xlane.xlu1 %893  ;;  %v1895_v8 = vpop.eup %1894 }
 0x280   : > { %1900 = vrcp.f32 %v894_v51  ;;  %1055 = vmatprep.mubr.bf16.mxu1 %v970_v31  ;;  %v944_v14 = vmul.f32 %v1895_v8, %v2418_v4  ;;  %v943_v17 = vmul.f32 %v1895_v8, %v2416_v54  ;;  %v2845_v4 = vpack.c.bf16 %v2532_v35, %v2524_v6  ;;  %v2852_v51 = vld [vmem:[#allocation35_spill] sm:$0xff] }
 0x281   : > { %1056 = vmatmul.mubr.bf16.gmra.mrb[12].mxu1 %v969_v43  ;;  %v2846_v35 = vpack.c.bf16 %v2528_v32, %v2522_v39 }
 0x282   : > { %v1897_v56 = vpop.eup %1896  ;;  %1067 = vmatpush1.bf16.xpose.msra.mxu1 %v2842_v15 }
 0x283   : > { %v945_v63 = vmul.f32 %v1897_v56, %v2420_v16  ;;  %1113 = vmatprep.subr.bf16.mxu1 %v2843_v12  ;;  %v946_v2 = vmul.f32 %v1897_v56, %v2426_v28 }
 0x284   : > { %v897_v3 = vpop.xlane.xlu0 %896 }
 0x285   : > { %v972_v9 = vpack.c.bf16 %v946_v2, %v944_v14  ;;  %1902 = vrcp.f32 %v897_v3  ;;  %v971_v53 = vpack.c.bf16 %v945_v63, %v943_v17  ;;  %v2857_v14 = vld [vmem:[#allocation39_spill] sm:$0xff]  ;;  %v2858_v2 = vld [vmem:[#allocation10_spill] sm:$0xff]  ;;  %v2859_v3 = vld [vmem:[#allocation8_spill] sm:$0xff] }
 0x287   : > { %v900_v7 = vpop.xlane.xlu1 %899  ;;  %1096 = vmatprep.mubr.bf16.mxu1 %v972_v9  ;;  %v1899_v10 = vpop.eup %1898 }
 0x288   : > { %1904 = vrcp.f32 %v900_v7  ;;  %v948_v28 = vmul.f32 %v1899_v10, %v2434_v57  ;;  %v947_v19 = vmul.f32 %v1899_v10, %v2432_v58  ;;  %v2862_v7 = vld [vmem:[#allocation36_spill] sm:$0xff]  ;;  %v2863_v10 = vld [vmem:[#allocation9_spill] sm:$0xff] }
 0x289   : > { %1097 = vmatmul.mubr.bf16.vlgmr.msra.gmra.mrb[16].mxu1 %v971_v53 }
 0x28a   : > { %v1901_v16 = vpop.eup %1900  ;;  %1114 = vmatpush1.bf16.xpose.msra.mxu1 %v2844_v46 }
 0x28b   : > { %1115 = vmatprep.subr.bf16.mxu1 %v2845_v4  ;;  %v950_v54 = vmul.f32 %v1901_v16, %v2442_v5  ;;  %v949_v49 = vmul.f32 %v1901_v16, %v2436_v61  ;;  %v2847_v61 = vpack.c.bf16 %v2554_v26, %v2548_v47  ;;  %v2848_v47 = vpack.c.bf16 %v2550_v36, %v2546_v44  ;;  %v2864_v16 = vld [vmem:[#allocation7_spill] sm:$0xff]  ;;  %v2866_v4 = vld [vmem:[#allocation14_spill] sm:$0xff] }
 0x28c   : > { %v903_v59 = vpop.xlane.xlu0 %902  ;;  %v2865_v46 = vpack.c.bf16 %v2863_v10, %v2864_v16  ;;  %v2883_v10 = vld [vmem:[#allocation19_spill] sm:$0xff] }
 0x28d   : > { %v974_v38 = vpack.c.bf16 %v950_v54, %v948_v28  ;;  %1906 = vrcp.f32 %v903_v59  ;;  %v973_v52 = vpack.c.bf16 %v949_v49, %v947_v19  ;;  %v2867_v28 = vld [vmem:[#allocation12_spill] sm:$0xff]  ;;  %v2869_v59 = vmov 0  }
 0x28e   : > { %v2868_v54 = vpack.c.bf16 %v2866_v4, %v2867_v28  ;;  %v2886_v4 = vld [vmem:[#allocation24_spill] sm:$0xff] }
 0x28f   : > { %v906_v62 = vpop.xlane.xlu1 %905  ;;  %1104 = vmatprep.mubr.bf16.mxu1 %v974_v38  ;;  %v1903_v42 = vpop.eup %1902 }
 0x290   : > { %1908 = vrcp.f32 %v906_v62  ;;  %v952_v58 = vmul.f32 %v1903_v42, %v2454_v60  ;;  %v951_v18 = vmul.f32 %v1903_v42, %v2450_v13  ;;  %v2849_v60 = vpack.c.bf16 %v2564_v45, %v2560_v11 }
 0x291   : > { %1105 = vmatmul.mubr.bf16.gmra.mrb[20].mxu1 %v973_v52  ;;  %v2850_v11 = vpack.c.bf16 %v2562_v40, %v2558_v37  ;;  %v2853_v37 = vld [vmem:[#allocation6_spill] sm:$0xff]  ;;  %v2854_v40 = vld [vmem:[#allocation5_spill] sm:$0xff] }
 0x292   : > { %v1905_v1 = vpop.eup %1904  ;;  %1116 = vmatpush1.bf16.xpose.msra.mxu1 %v2846_v35  ;;  %v2855_v12 = vpack.c.bf16 %v2853_v37, %v2854_v40  ;;  %v2870_v37 = vld [vmem:[#allocation13_spill] sm:$0xff]  ;;  %v2871_v40 = vld [vmem:[#allocation11_spill] sm:$0xff] }
 0x293   : > { %v953_v57 = vmul.f32 %v1905_v1, %v2458_v34  ;;  %1162 = vmatprep.subr.bf16.mxu1 %v2847_v61  ;;  %v954_v5 = vmul.f32 %v1905_v1, %v2464_v27 }
 0x294   : > { %v909_v6 = vpop.xlane.xlu0 %908 }
 0x295   : > { %1910 = vrcp.f32 %v909_v6  ;;  %v976_v30 = vpack.c.bf16 %v954_v5, %v952_v58  ;;  %v975_v39 = vpack.c.bf16 %v953_v57, %v951_v18 }
 0x296   : > { %v912_v33 = vpop.xlane.xlu1 %911 }
 0x297   : > { %1912 = vrcp.f32 %v912_v33  ;;  %1145 = vmatprep.mubr.bf16.mxu1 %v976_v30  ;;  %v1907_v32 = vpop.eup %1906 }
 0x298   : > { %v956_v27 = vmul.f32 %v1907_v32, %v2478_v24  ;;  %v955_v29 = vmul.f32 %v1907_v32, %v2474_v48  ;;  %v2851_v48 = vpack.c.bf16 %v2163_v25, %v2155_v22  ;;  %v2860_v22 = vpack.c.bf16 %v2858_v2, %v2859_v3  ;;  %v2861_v25 = vld [vmem:[#allocation38_spill] sm:$0xff]  ;;  %v2877_v2 = vld [vmem:[#allocation15_spill] sm:$0xff] }
 0x299   : > { %1146 = vmatmul.mubr.bf16.vlgmr.msra.gmra.mrb[24].mxu1 %v975_v39 }
 0x29a   : > { %v1909_v34 = vpop.eup %1908  ;;  %1163 = vmatpush1.bf16.xpose.msra.mxu1 %v2848_v47 }
 0x29b   : > { %1164 = vmatprep.subr.bf16.mxu1 %v2849_v60  ;;  %v958_v13 = vmul.f32 %v1909_v34, %v2490_v50  ;;  %v957_v26 = vmul.f32 %v1909_v34, %v2482_v0 }
 0x29c   : > { %v915_v20 = vpop.xlane.xlu0 %914 }
 0x29d   : > { %1914 = vrcp.f32 %v915_v20  ;;  %v978_v23 = vpack.c.bf16 %v958_v13, %v956_v27  ;;  %v977_v36 = vpack.c.bf16 %v957_v26, %v955_v29 }
 0x29e   : > { %v918_v31 = vpop.xlane.xlu1 %917 }
 0x29f   : > { %v1911_v43 = vpop.eup %1910  ;;  %1916 = vrcp.f32 %v918_v31  ;;  %1153 = vmatprep.mubr.bf16.mxu1 %v978_v23 }
 0x2a0   : > { %v960_v24 = vmul.f32 %v1911_v43, %v2506_v41  ;;  %v959_v8 = vmul.f32 %v1911_v43, %v2852_v51  ;;  %v2856_v41 = vld [vmem:[#allocation37_spill] sm:$0xff] }
 0x2a1   : > { %v1913_v44 = vpop.eup %1912  ;;  %1154 = vmatmul.mubr.bf16.gmra.mrb[28].mxu1 %v977_v36 }
 0x2a2   : > { %1165 = vmatpush1.bf16.xpose.msra.mxu1 %v2850_v11  ;;  %v962_v0 = vmul.f32 %v1913_v44, %v2518_v21  ;;  %v961_v50 = vmul.f32 %v1913_v44, %v2512_v55 }
 0x2a3   : > { %1242 = vmatprep.subr.bf16.mxu1 %v2851_v48 }
 0x2a4   : > { %v980_v45 = vpack.c.bf16 %v962_v0, %v960_v24  ;;  %v979_v15 = vpack.c.bf16 %v961_v50, %v959_v8 }
 0x2a6   : > { %1194 = vmatprep.mubr.bf16.mxu1 %v980_v45 }
 0x2a7   : > { %v1915_v56 = vpop.eup %1914 }
 0x2a8   : > { %v964_v21 = vmul.f32 %v1915_v56, %v2856_v41  ;;  %v963_v53 = vmul.f32 %v1915_v56, %v2862_v7  ;;  %v2873_v41 = vld [vmem:[#allocation18_spill] sm:$0xff] }
 0x2a9   : > { %v1917_v63 = vpop.eup %1916  ;;  %1195 = vmatmul.mubr.bf16.vlgmr.msra.gmra.mrb[32].mxu1 %v979_v15 }
 0x2aa   : > { %1243 = vmatpush1.bf16.msra.mxu1 %v2855_v12  ;;  %v966_v55 = vmul.f32 %v1917_v63, %v2857_v14  ;;  %v965_v17 = vmul.f32 %v1917_v63, %v2861_v25  ;;  %v2872_v12 = vpack.c.bf16 %v2870_v37, %v2871_v40  ;;  %v2879_v25 = vld [vmem:[#allocation22_spill] sm:$0xff] }
 0x2ab   : > { %1244 = vmatprep.subr.bf16.mxu1 %v2860_v22 }
 0x2ac   : > { %v982_v9 = vpack.c.bf16 %v966_v55, %v964_v21  ;;  %v981_v49 = vpack.c.bf16 %v965_v17, %v963_v53  ;;  %v2874_v21 = vld [vmem:[#allocation16_spill] sm:$0xff]  ;;  %v2876_v55 = vld [vmem:[#allocation17_spill] sm:$0xff] }
 0x2ad   : > { %v2875_v14 = vpack.c.bf16 %v2873_v41, %v2874_v21  ;;  %v2878_v3 = vpack.c.bf16 %v2876_v55, %v2877_v2  ;;  %v2880_v17 = vld [vmem:[#allocation20_spill] sm:$0xff]  ;;  %v2882_v53 = vld [vmem:[#allocation21_spill] sm:$0xff] }
 0x2ae   : > { %1245 = vmatpush1.bf16.msra.mxu1 %v2865_v46  ;;  %1202 = vmatprep.mubr.bf16.mxu1 %v982_v9  ;;  %v2881_v9 = vpack.c.bf16 %v2879_v25, %v2880_v17  ;;  %v2884_v16 = vpack.c.bf16 %v2882_v53, %v2883_v10  ;;  %v2885_v46 = vld [vmem:[#allocation26_spill] sm:$0xff] }
 0x2af   : > { %1317 = vmatprep.subr.bf16.mxu1 %v2868_v54  ;;  %v2887_v28 = vpack.c.bf16 %v2885_v46, %v2886_v4  ;;  %v2888_v54 = vld [vmem:[#allocation25_spill] sm:$0xff] }
 0x2b1   : > { %1203 = vmatmul.mubr.bf16.gmra.mrb[36].mxu1 %v981_v49  ;;  %v2889_v49 = vld [vmem:[#allocation23_spill] sm:$0xff] }
 0x2b2   : > { %1274 = vmatprep.mubr.bf16.mxu1 %v2869_v59 }
 0x34c   : > { %v1049_v38 = vpop.f32.mrb[8].mxu1 }
 0x34d   : > { %v1051_v19 = vpop.f32.mrb[9].mxu1 }
 0x34e   : > { %v1052_v62 = vpop.f32.mrb[10].mxu1 }
 0x34f   : > { %v1211_v52 = vpack.c.bf16 %v1052_v62, %v1049_v38  ;;  %v1054_v42 = vpop.f32.mrb[11].mxu1  ;;  %v2890_v38 = vpack.c.bf16 %v2888_v54, %v2889_v49  ;;  %v2891_v62 = vld [vmem:[#allocation30_spill] sm:$0xff] }
 0x351   : > { %1219 = vxpose.xlu0.c.b16.start [1/2] (short) (narrow) %v1211_v52, 32  ;;  %v2892_v52 = vld [vmem:[#allocation28_spill] sm:$0xff] }
 0x352   : > { %v2893_v42 = vpack.c.bf16 %v2891_v62, %v2892_v52 }
 0x354   : > { %v1057_v1 = vpop.f32.mrb[12].mxu1 }
 0x355   : > { %v1059_v35 = vpop.f32.mrb[13].mxu1 }
 0x356   : > { %v1060_v57 = vpop.f32.mrb[14].mxu1  ;;  %v2894_v35 = vld [vmem:[#allocation29_spill] sm:$0xff] }
 0x357   : > { %v1212_v61 = vpack.c.bf16 %v1060_v57, %v1057_v1  ;;  %v1062_v58 = vpop.f32.mrb[15].mxu1  ;;  %v2895_v57 = vld [vmem:[#allocation27_spill] sm:$0xff] }
 0x358   : > { %v2897_v58 = vld [vmem:[#allocation34_spill] sm:$0xff] }
 0x359   : > { %1220 = vxpose.xlu0.c.b16.end [2/2] (short) (narrow) %v1212_v61, 32  ;;  %v2896_v61 = vpack.c.bf16 %v2894_v35, %v2895_v57 }
 0x35c   : > { %v1098_v5 = vpop.f32.mrb[16].mxu1 }
 0x35d   : > { %v1100_v6 = vpop.f32.mrb[17].mxu1 }
 0x35e   : > { %v1101_v18 = vpop.f32.mrb[18].mxu1 }
 0x35f   : > { %v1213_v30 = vpack.c.bf16 %v1101_v18, %v1098_v5  ;;  %v1103_v33 = vpop.f32.mrb[19].mxu1  ;;  %v2898_v5 = vld [vmem:[#allocation32_spill] sm:$0xff]  ;;  %v2900_v18 = vld [vmem:[#allocation33_spill] sm:$0xff] }
 0x360   : > { %v2899_v6 = vpack.c.bf16 %v2897_v58, %v2898_v5 }
 0x361   : > { %1295 = vxpose.xlu1.c.b16.start [1/2] (short) (narrow) %v1213_v30, 32  ;;  %v2901_v30 = vld [vmem:[#allocation31_spill] sm:$0xff] }
 0x362   : > { %v2902_v33 = vpack.c.bf16 %v2900_v18, %v2901_v30 }
 0x364   : > { %v1106_v39 = vpop.f32.mrb[20].mxu1 }
 0x365   : > { %v1108_v32 = vpop.f32.mrb[21].mxu1 }
 0x366   : > { %v1109_v34 = vpop.f32.mrb[22].mxu1 }
 0x367   : > { %v1214_v47 = vpack.c.bf16 %v1109_v34, %v1106_v39  ;;  %v1111_v60 = vpop.f32.mrb[23].mxu1 }
 0x368   : > { %v250_v60 = vld [vmem:[%s2764_s3 + $0x8] sm:$0xff] }
 0x369   : > { %1296 = vxpose.xlu1.c.b16.end [2/2] (short) (narrow) %v1214_v47, 32  ;;  %v249_v47 = vld [vmem:[%s2764_s3] sm:$0xff] }
 0x36c   : > { %v1147_v27 = vpop.f32.mrb[24].mxu1 }
 0x36d   : > { %v1149_v13 = vpop.f32.mrb[25].mxu1 }
 0x36e   : > { %v1150_v26 = vpop.f32.mrb[26].mxu1 }
 0x36f   : > { %v1215_v20 = vpack.c.bf16 %v1150_v26, %v1147_v27  ;;  %v1152_v23 = vpop.f32.mrb[27].mxu1 }
 0x371   : > { %1370 = vxpose.xlu0.c.b16.start [1/2] (short) (narrow) %v1215_v20, 32 }
 0x374   : > { %v1155_v29 = vpop.f32.mrb[28].mxu1 }
 0x375   : > { %v1157_v31 = vpop.f32.mrb[29].mxu1 }
 0x376   : > { %v1158_v43 = vpop.f32.mrb[30].mxu1 }
 0x377   : > { %v1216_v36 = vpack.c.bf16 %v1158_v43, %v1155_v29  ;;  %v1160_v44 = vpop.f32.mrb[31].mxu1 }
 0x379   : > { %1371 = vxpose.xlu0.c.b16.end [2/2] (short) (narrow) %v1216_v36, 32 }
 0x37c   : > { %v1196_v11 = vpop.f32.mrb[32].mxu1 }
 0x37d   : > { %v1198_v24 = vpop.f32.mrb[33].mxu1 }
 0x37e   : > { %v1199_v0 = vpop.f32.mrb[34].mxu1 }
 0x37f   : > { %v1217_v50 = vpack.c.bf16 %v1199_v0, %v1196_v11  ;;  %v1201_v48 = vpop.f32.mrb[35].mxu1 }
 0x381   : > { %1445 = vxpose.xlu1.c.b16.start [1/2] (short) (narrow) %v1217_v50, 32 }
 0x382   : > { %1792 = vset.pattern.permute.xlu0 %v2869_v59 }
 0x383   : > { %1538 = vperm.xlu0 %1792, %v249_v47  }
 0x384   : > { %v1204_v45 = vpop.f32.mrb[36].mxu1 }
 0x385   : > { %v1206_v51 = vpop.f32.mrb[37].mxu1 }
 0x386   : > { %v1207_v8 = vpop.f32.mrb[38].mxu1 }
 0x387   : > { %v1218_v56 = vpack.c.bf16 %v1207_v8, %v1204_v45  ;;  %v1209_v15 = vpop.f32.mrb[39].mxu1 }
 0x389   : > { %1446 = vxpose.xlu1.c.b16.end [2/2] (short) (narrow) %v1218_v56, 32 }
 0x38d   : > { %1793 = vset.pattern.permute.xlu1 %v2869_v59 }
 0x38e   : > { %1543 = vperm.xlu1 %1793, %v250_v60  }
 0x3bb   : > { %v1227_v63 = vpop.trf.xlu0 }
 0x3bc   : > { %1732 = vmatmul.mubr.msk.bf16.vlgmr.msra.gmra.mrb[40].mxu1 %vm1235_vm1, %v1227_v63 }
 0x3bd   : > { %1318 = vmatpush1.bf16.msra.mxu1 %v2872_v12  ;;  %1284 = vmatprep.mubr.bf16.mxu1 %v2869_v59 }
 0x3be   : > { %1319 = vmatprep.subr.bf16.mxu1 %v2875_v14 }
 0x3bf   : > { %v1228_v22 = vpop.trf.xlu0 }
 0x3c1   : > { %1320 = vmatpush1.bf16.msra.mxu1 %v2878_v3 }
 0x3c2   : > { %1392 = vmatprep.subr.bf16.mxu1 %v2881_v9 }
 0x3c4   : > { %1733 = vmatmul.mubr.msk.bf16.gmra.mrb[44].mxu1 %vm1235_vm1, %v1228_v22 }
 0x3c5   : > { %1349 = vmatprep.mubr.bf16.mxu1 %v2869_v59 }
 0x3cb   : > { %v1303_v7 = vpop.trf.xlu1 }
 0x3cc   : > { %1734 = vmatmul.mubr.msk.bf16.vlgmr.msra.gmra.mrb[48].mxu1 %vm1235_vm1, %v1303_v7 }
 0x3cd   : > { %1393 = vmatpush1.bf16.msra.mxu1 %v2884_v16  ;;  %1359 = vmatprep.mubr.bf16.mxu1 %v2869_v59 }
 0x3ce   : > { %1394 = vmatprep.subr.bf16.mxu1 %v2887_v28 }
 0x3cf   : > { %v1304_v19 = vpop.trf.xlu1 }
 0x3d1   : > { %1395 = vmatpush1.bf16.msra.mxu1 %v2890_v38 }
 0x3d2   : > { %1467 = vmatprep.subr.bf16.mxu1 %v2893_v42  ;;  %v1821_v42 = vld [vmem:[%s2763_s2] sm:$0xff]  }
 0x3d4   : > { %1735 = vmatmul.mubr.msk.bf16.gmra.mrb[52].mxu1 %vm1235_vm1, %v1304_v19 }
 0x3d5   : > { %1424 = vmatprep.mubr.bf16.mxu1 %v2869_v59 }
 0x3db   : > { %v1378_v1 = vpop.trf.xlu0 }
 0x3dc   : > { %1736 = vmatmul.mubr.msk.bf16.vlgmr.msra.gmra.mrb[56].mxu1 %vm1235_vm1, %v1378_v1 }
 0x3dd   : > { %1468 = vmatpush1.bf16.msra.mxu1 %v2896_v61  ;;  %1434 = vmatprep.mubr.bf16.mxu1 %v2869_v59 }
 0x3de   : > { %1469 = vmatprep.subr.bf16.mxu1 %v2899_v6 }
 0x3df   : > { %v1379_v39 = vpop.trf.xlu0 }
 0x3e1   : > { %1470 = vmatpush1.bf16.msra.mxu1 %v2902_v33 }
 0x3e4   : > { %1737 = vmatmul.mubr.msk.bf16.gmra.mrb[60].mxu1 %vm1235_vm1, %v1379_v39 }
 0x3e5   : > { %1499 = vmatprep.mubr.bf16.mxu1 %v2869_v59 }
 0x3eb   : > { %v1453_v32 = vpop.trf.xlu1 }
 0x3ec   : > { %1738 = vmatmul.mubr.msk.bf16.vlgmr.msra.gmra.mrb[64].mxu1 %vm1235_vm1, %v1453_v32 }
 0x3ed   : > { %1509 = vmatprep.mubr.bf16.mxu1 %v2869_v59 }
 0x3ef   : > { %v1454_v34 = vpop.trf.xlu1 }
 0x3f4   : > { %1739 = vmatmul.mubr.msk.bf16.gmra.mrb[68].mxu1 %vm1235_vm1, %v1454_v34 }
 0x3f5   : > { %1584 = vmatprep.mubr.bf16.mxu1 %v2869_v59 }
 0x402   : > { %v1539_v1 = vpop.permute.xlu0 %1538 }
 0x40d   : > { %v1544_v57 = vpop.permute.xlu1 %1543 }
 0x48f   : > { %v1276_v27 = vpop.f32.mrb[40].mxu1 }
 0x490   : > { %v1278_v13 = vpop.f32.mrb[41].mxu1 }
 0x491   : > { %v1280_v26 = vpop.f32.mrb[42].mxu1 }
 0x492   : > { %v1520_v20 = vpack.c.bf16 %v1280_v26, %v1276_v27  ;;  %v1282_v23 = vpop.f32.mrb[43].mxu1 }
 0x493   : > { %v1521_v29 = vpack.c.bf16 %v1282_v23, %v1278_v13 }
 0x495   : > { %1552 = vmatprep.subr.bf16.mxu1 %v1521_v29 }
 0x496   : > { %1553 = vmatpush1.bf16.msra.mxu1 %v1520_v20 }
 0x497   : > { %v1286_v31 = vpop.f32.mrb[44].mxu1 }
 0x498   : > { %v1288_v59 = vpop.f32.mrb[45].mxu1 }
 0x499   : > { %v1290_v43 = vpop.f32.mrb[46].mxu1 }
 0x49a   : > { %v1522_v36 = vpack.c.bf16 %v1290_v43, %v1286_v31  ;;  %v1292_v44 = vpop.f32.mrb[47].mxu1 }
 0x49b   : > { %v1523_v11 = vpack.c.bf16 %v1292_v44, %v1288_v59 }
 0x49d   : > { %1554 = vmatprep.subr.bf16.mxu1 %v1523_v11 }
 0x49e   : > { %1555 = vmatpush1.bf16.msra.mxu1 %v1522_v36 }
 0x49f   : > { %v1351_v24 = vpop.f32.mrb[48].mxu1 }
 0x4a0   : > { %v1353_v0 = vpop.f32.mrb[49].mxu1 }
 0x4a1   : > { %v1355_v50 = vpop.f32.mrb[50].mxu1 }
 0x4a2   : > { %v1524_v48 = vpack.c.bf16 %v1355_v50, %v1351_v24  ;;  %v1357_v45 = vpop.f32.mrb[51].mxu1 }
 0x4a3   : > { %v1525_v51 = vpack.c.bf16 %v1357_v45, %v1353_v0 }
 0x4a5   : > { %1556 = vmatprep.subr.bf16.mxu1 %v1525_v51 }
 0x4a6   : > { %1557 = vmatpush1.bf16.msra.mxu1 %v1524_v48 }
 0x4a7   : > { %v1361_v8 = vpop.f32.mrb[52].mxu1 }
 0x4a8   : > { %v1363_v56 = vpop.f32.mrb[53].mxu1 }
 0x4a9   : > { %v1365_v15 = vpop.f32.mrb[54].mxu1 }
 0x4aa   : > { %v1526_v63 = vpack.c.bf16 %v1365_v15, %v1361_v8  ;;  %v1367_v37 = vpop.f32.mrb[55].mxu1 }
 0x4ab   : > { %v1527_v40 = vpack.c.bf16 %v1367_v37, %v1363_v56 }
 0x4ad   : > { %1558 = vmatprep.subr.bf16.mxu1 %v1527_v40 }
 0x4ae   : > { %1559 = vmatpush1.bf16.msra.mxu1 %v1526_v63 }
 0x4af   : > { %v1426_v12 = vpop.f32.mrb[56].mxu1 }
 0x4b0   : > { %v1428_v41 = vpop.f32.mrb[57].mxu1 }
 0x4b1   : > { %v1430_v21 = vpop.f32.mrb[58].mxu1 }
 0x4b2   : > { %v1528_v14 = vpack.c.bf16 %v1430_v21, %v1426_v12  ;;  %v1432_v55 = vpop.f32.mrb[59].mxu1 }
 0x4b3   : > { %v1529_v2 = vpack.c.bf16 %v1432_v55, %v1428_v41 }
 0x4b5   : > { %1560 = vmatprep.subr.bf16.mxu1 %v1529_v2 }
 0x4b6   : > { %1561 = vmatpush1.bf16.msra.mxu1 %v1528_v14 }
 0x4b7   : > { %v1436_v3 = vpop.f32.mrb[60].mxu1 }
 0x4b8   : > { %v1438_v22 = vpop.f32.mrb[61].mxu1 }
 0x4b9   : > { %v1440_v25 = vpop.f32.mrb[62].mxu1 }
 0x4ba   : > { %v1530_v17 = vpack.c.bf16 %v1440_v25, %v1436_v3  ;;  %v1442_v9 = vpop.f32.mrb[63].mxu1 }
 0x4bb   : > { %v1531_v7 = vpack.c.bf16 %v1442_v9, %v1438_v22 }
 0x4bd   : > { %1562 = vmatprep.subr.bf16.mxu1 %v1531_v7 }
 0x4be   : > { %1563 = vmatpush1.bf16.msra.mxu1 %v1530_v17 }
 0x4bf   : > { %v1501_v53 = vpop.f32.mrb[64].mxu1 }
 0x4c0   : > { %v1503_v10 = vpop.f32.mrb[65].mxu1 }
 0x4c1   : > { %v1505_v16 = vpop.f32.mrb[66].mxu1 }
 0x4c2   : > { %v1532_v46 = vpack.c.bf16 %v1505_v16, %v1501_v53  ;;  %v1507_v4 = vpop.f32.mrb[67].mxu1 }
 0x4c3   : > { %v1533_v28 = vpack.c.bf16 %v1507_v4, %v1503_v10 }
 0x4c5   : > { %1564 = vmatprep.subr.bf16.mxu1 %v1533_v28 }
 0x4c6   : > { %1565 = vmatpush1.bf16.msra.mxu1 %v1532_v46 }
 0x4c7   : > { %v1511_v54 = vpop.f32.mrb[68].mxu1 }
 0x4c8   : > { %v1513_v49 = vpop.f32.mrb[69].mxu1 }
 0x4c9   : > { %v1515_v38 = vpop.f32.mrb[70].mxu1 }
 0x4ca   : > { %v1534_v19 = vpack.c.bf16 %v1515_v38, %v1511_v54  ;;  %v1517_v62 = vpop.f32.mrb[71].mxu1 }
 0x4cb   : > { %v1535_v52 = vpack.c.bf16 %v1517_v62, %v1513_v49 }
 0x4cd   : > { %1566 = vmatprep.subr.bf16.mxu1 %v1535_v52 }
 0x4ce   : > { %1567 = vmatpush1.bf16.msra.mxu1 %v1534_v19 }
 0x4d1   : > { %1585 = vmatmul.mubr.bf16.vlgmr.msra.gmra.mrb[72].mxu1 %v1821_v42 }
 0x5a4   : > { %v1586_v35 = vpop.f32.mrb[72].mxu1 }
 0x5a5   : > { %v1587_v61 = vadd.f32 %v1586_v35, %v1539_v1  ;;  %v1588_v58 = vpop.f32.mrb[73].mxu1 }
 0x5a6   : > { %v1589_v5 = vadd.f32 %v1588_v58, %v1539_v1  ;;  %v1590_v6 = vpop.f32.mrb[74].mxu1 }
 0x5a7   : > { %1595 = vst [vmem:[%s190_s11] sm:$0xff] %v1587_v61  ;;  %v1591_v18 = vadd.f32 %v1590_v6, %v1544_v57  ;;  %v1592_v30 = vpop.f32.mrb[75].mxu1 }
 0x5a8   : > { %1596 = vst [vmem:[%s190_s11 + $0x8] sm:$0xff] %v1589_v5  ;;  %v1593_v33 = vadd.f32 %v1592_v30, %v1544_v57 }
 0x5a9   : > { %1597 = vst [vmem:[%s190_s11 + $0x10] sm:$0xff] %v1591_v18 }
 0x5aa   : > { %1598 = vst [vmem:[%s190_s11 + $0x18] sm:$0xff] %v1593_v33 }
 0x5ab   : > { %1931 = shalt.err (!%p1928_p3)
}
 0x5ac   : > { %s1932_s30 = scalar_lea.hbm %s2718_s22, 512  ;;  %s1936_s7 = scalar_lea.hbm %s2765_s4, 1024 }
 0x5ad   : > { %p1933_p4 = scmp.ne.s32.totalorder %s2718_s22, %s1932_s30  ;;  %p1937_p9 = scmp.lt.u32.totalorder %s2718_s22, %s2765_s4 }
 0x5ae   : > { %p1938_p10 = scmp.lt.u32.totalorder %s1936_s7, %s1932_s30  ;;  %p1940_p12 = scmp.lt.u32.totalorder %s1932_s30, %s2718_s22 }
 0x5af   : > { %p1934_p7 = pnand %p1933_p4, %p2049_p5 }
 0x5b0   : > { %p1939_p11 = por %p1938_p10, %p1937_p9 }
 0x5b1   : > { %p1935_p8 = pneg %p1934_p7 }
 0x5b2   : > { %p1941_p13 = por %p1940_p12, %p1939_p11 }
 0x5b4   : > { %p1942_p0 = pnand %p1941_p13, %p1935_p8 }
 0x5b6   : > { %1945 = shalt.err (!%p1942_p0)
}
 0x5b7   : > { %s1984_s10 = smov 256   ;;  %s1985_s11 = smov 16  }
 0x5b8   : > { %1750 = dma.vmem_to_hbm [thread:$0]  (%p2049_p5), %s2713_s12, 512, %s2718_s22, %s2720_s19, %s1984_s10, %s1984_s10, %s1985_s11  }
 0x5b9 PF: > { %p1756_p1 = scmp.ge.s32.totalorder %s1980_s18, 2  ;;  %s1628_s13 = sand.u32 1, %s1968_s15  }
 0x5ba   : > { %s1629_s14 = scalar_lea.sflag [#allocation3], %s1628_s13 }
 0x5bb   : > { %p1753_p2 = pnand %p1756_p1, %p2053_p6 }
 0x5bd   : > { %1963 = dma.done.wait (!%p1753_p2), %s1629_s14, 512  }
 0x5be   : > { %1965 = vsyncadd (!%p1753_p2), %s1629_s14, 4294966784  ;;  %p14_p3 = scmp.ge.s32.totalorder %s2036_s21, 4   ;;  %s2903_s15 = smov %s1972_s16 }
 0x5bf   : > { %s2904_s16 = smov %s1976_s17  ;;  %s2905_s17 = smov %s2047_s24 }
 0x5c0   : > { %s2906_s18 = smov %s2036_s21  ;;  %16 = sbr.rel (!%p14_p3) target bundleno = 3 (0x3), region = 71 }
 0x5c7   :  { %1634 = vsyncpa [#allocation3], 1 }
 0x5c8   :  { %1636 = vsyncpa [#allocation3 + $0x1], 1 }

</bundles_post_ra>
